<compile_context>
chip_gen: v6e
topology: v6e:2x2x1
jax: 0.10.0
libtpu: 0.0.40
codegen_flags: <defaults>
</compile_context>

<pallas_src>
import jax
import jax.numpy as jnp
from jax import lax
from jax.experimental import pallas as pl
from jax.experimental.pallas import tpu as pltpu

H1_PAD = 128  # hidden dim 120 padded to the native 128-lane width
H2_PAD = 128  # hidden dim 84 padded to the native 128-lane width

_VMEM_BUDGET = 12 * 1024 * 1024  # keep per-step working set under v5e's 16 MiB


def _round_up(x, m):
    return (x + m - 1) // m * m


def _cdiv(a, b):
    return (a + b - 1) // b


def _vmem_bytes(tb, F):
    """Rough per-step VMEM budget for the auto-pipelined kernel."""
    x_bufs = 2 * tb * F * 4                   # double-buffered f32 input tiles
    out_bufs = 2 * tb * 4                     # double-buffered (1, tb) f32 output tiles
    weights = 2 * (F * H1_PAD * 2 + H1_PAD * H2_PAD * 2 + (3 * 128 + 1) * 4)
    interm = 4 * tb * 128 * 4                 # h1 f32 + h1 bf16 + h2t f32 + slack
    return x_bufs + out_bufs + weights + interm


def mlp_kernel(x_ref, w1_ref, b1_ref, w2t_ref, b2t_ref, w3t_ref, b3_ref, o_ref):
    # Layer 1: cast x f32->bf16 in-kernel (halves x HBM traffic vs wrapper cast),
    # (tb, F) @ (F, 128) on the MXU with f32 accumulation; bias + ReLU in f32.
    x = x_ref[...].astype(jnp.bfloat16)
    h1 = jnp.dot(x, w1_ref[...], preferred_element_type=jnp.float32)
    h1 = jnp.maximum(h1 + b1_ref[...], 0.0)

    # Layer 2, transposed output: contract the LAST dims of w2t (128, 128) and
    # h1 (tb, 128)  ->  h2t (128, tb).  This is the MXU-native A @ B^T pattern,
    # and it puts the batch on the lane axis so the final store is lane-dense.
    h2t = lax.dot_general(
        w2t_ref[...], h1.astype(jnp.bfloat16),
        dimension_numbers=(((1,), (1,)), ((), ())),
        preferred_element_type=jnp.float32)
    h2t = jnp.maximum(h2t + b2t_ref[...], 0.0)          # b2t: (128, 1) lane-broadcast

    # Layer 3 (N=1): weighted cross-sublane reduce on the VPU/XLU -> (1, tb).
    out = jnp.sum(h2t * w3t_ref[...], axis=0, keepdims=True) + b3_ref[...]
    o_ref[...] = out.astype(o_ref.dtype)


def prepare_params(params):
    """One-time host-side prep: zero-pad hidden dims to 128, bf16 matmul weights,
    f32 biases.  Layer-2 weight is stored pre-transposed (H2_PAD, H1_PAD) and the
    layer-2/3 bias/weight as (128, 1) columns for the transposed second half."""
    w1, b1 = params["w1"], params["b1"]
    w2, b2 = params["w2"], params["b2"]
    w3, b3 = params["w3"], params["b3"]
    F = w1.shape[0]

    w1p = (jnp.zeros((F, H1_PAD), jnp.float32)
           .at[:, : w1.shape[1]].set(w1).astype(jnp.bfloat16))
    b1p = jnp.zeros((1, H1_PAD), jnp.float32).at[:, : b1.shape[1]].set(b1)

    w2tp = (jnp.zeros((H2_PAD, H1_PAD), jnp.float32)
            .at[: w2.shape[1], : w2.shape[0]].set(w2.T).astype(jnp.bfloat16))
    b2tp = jnp.zeros((H2_PAD, 1), jnp.float32).at[: b2.shape[1], 0].set(b2[0])

    w3tp = jnp.zeros((H2_PAD, 1), jnp.float32).at[: w3.shape[0], 0].set(w3[:, 0])
    b3p = b3.reshape(1, 1).astype(jnp.float32)
    return w1p, b1p, w2tp, b2tp, w3tp, b3p


def _pallas_mlp(x, w1, b1, w2t, b2t, w3t, b3, *, tb, grid, b_out,
                single_buffer_weights, flops, bytes_accessed):
    F = x.shape[1]
    # Constant-index weight/bias blocks: request single buffering (they are
    # fetched once and never revisited), buying VMEM headroom for large tiles.
    wmode = pl.Buffered(1) if single_buffer_weights else None

    def const_spec(shape):
        return pl.BlockSpec(shape, lambda i: (0, 0), pipeline_mode=wmode)

    return pl.pallas_call(
        mlp_kernel,
        out_shape=jax.ShapeDtypeStruct((1, b_out), jnp.float32),
        grid=(grid,),
        in_specs=[
            pl.BlockSpec((tb, F), lambda i: (i, 0)),   # x: streamed over batch (f32)
            const_spec((F, H1_PAD)),                   # w1 (bf16), VMEM-resident
            const_spec((1, H1_PAD)),                   # b1 (f32)
            const_spec((H2_PAD, H1_PAD)),              # w2^T (bf16)
            const_spec((H2_PAD, 1)),                   # b2 as column (f32)
            const_spec((H2_PAD, 1)),                   # w3 as column (f32)
            const_spec((1, 1)),                        # b3 (f32)
        ],
        out_specs=pl.BlockSpec((1, tb), lambda i: (0, i)),   # lane-dense output row
        compiler_params=pltpu.CompilerParams(
            dimension_semantics=("parallel",),          # megacore split on v7x
            vmem_limit_bytes=32 * 1024 * 1024,          # explicit, portable limit
        ),
        cost_estimate=pl.CostEstimate(
            flops=flops, transcendentals=0, bytes_accessed=bytes_accessed),
    )(x, w1, b1, w2t, b2t, w3t, b3)


def mlp_forward(x, prepared, *, tile_b=2048):
    """x: (B, in_features) float32. prepared: output of prepare_params."""
    w1, b1, w2t, b2t, w3t, b3 = prepared
    B, F = x.shape

    # --- batch-tile selection -------------------------------------------------
    tb = _round_up(min(tile_b, _round_up(B, 128)), 128)
    # v7x megacore: keep >= 2 grid steps when the batch allows it (no-op on 1-TC gens).
    if _cdiv(B, tb) < 2 and B > 128:
        tb = max(128, _round_up(_cdiv(B, 2), 128))
    # VMEM budget clamp: stay under v5e's 16 MiB default scoped VMEM with headroom.
    while tb > 128 and _vmem_bytes(tb, F) > _VMEM_BUDGET:
        tb = max(128, _round_up(tb // 2, 128))

    # Partial last tiles are handled by Pallas boundary clamping (no full jnp.pad
    # pass over x).  Only the undersized single-block case gets a tiny host pad.
    x_in, B_in = x, B
    if B < tb:
        x_in = jnp.pad(x, ((0, tb - B), (0, 0)))
        B_in = tb

    grid = _cdiv(B_in, tb)
    b_out = grid * tb

    flops = 2 * b_out * (F * H1_PAD + H1_PAD * H2_PAD + H2_PAD)
    bytes_accessed = (
        x.size * 4 + B * 4                              # f32 x stream + f32 out
        + w1.size * 2 + w2t.size * 2                    # bf16 weights
        + (b1.size + b2t.size + w3t.size + b3.size) * 4
    )

    kwargs = dict(tb=tb, grid=grid, b_out=b_out,
                  flops=flops, bytes_accessed=bytes_accessed)
    try:
        out = _pallas_mlp(x_in, w1, b1, w2t, b2t, w3t, b3,
                          single_buffer_weights=True, **kwargs)
    except Exception:
        # Installed jax rejects pipeline_mode=pl.Buffered(1): fall back to the
        # default double-buffered weight blocks (costs ~80 KiB of VMEM only).
        out = _pallas_mlp(x_in, w1, b1, w2t, b2t, w3t, b3,
                          single_buffer_weights=False, **kwargs)

    # Padded tail lanes (>= B) hold garbage from clamped/padded x rows; the
    # slice below is what discards them -- do not remove.
    return out[0, :B].reshape(B, 1)


def init_params(key, in_features):
    """Deterministic init mirroring nn.Linear's uniform(-1/sqrt(fan_in), 1/sqrt(fan_in))."""
    ks = jax.random.split(key, 6)

    def linear(kw, kb, fan_in, fan_out):
        bound = 1.0 / jnp.sqrt(jnp.float32(fan_in))
        w = jax.random.uniform(kw, (fan_in, fan_out), jnp.float32, -bound, bound)
        b = jax.random.uniform(kb, (1, fan_out), jnp.float32, -bound, bound)
        return w, b

    w1, b1 = linear(ks[0], ks[1], in_features, 120)
    w2, b2 = linear(ks[2], ks[3], 120, 84)
    w3, b3 = linear(ks[4], ks[5], 84, 1)
    return {"w1": w1, "b1": b1, "w2": w2, "b2": b2, "w3": w3, "b3": b3}


def mlp_reference_f32(x, p):
    """Exact f32 reference (original module semantics)."""
    h1 = jnp.maximum(x @ p["w1"] + p["b1"], 0.0)
    h2 = jnp.maximum(h1 @ p["w2"] + p["b2"], 0.0)
    return h2 @ p["w3"] + p["b3"]


def mlp_reference_bf16(x, p):
    """Reference with the same bf16-matmul / f32-accumulate scheme as the kernel."""
    w1 = p["w1"].astype(jnp.bfloat16)
    w2 = p["w2"].astype(jnp.bfloat16)
    h1 = jnp.maximum(
        jnp.dot(x.astype(jnp.bfloat16), w1, preferred_element_type=jnp.float32)
        + p["b1"], 0.0)
    h2 = jnp.maximum(
        jnp.dot(h1.astype(jnp.bfloat16), w2, preferred_element_type=jnp.float32)
        + p["b2"], 0.0)
    return h2 @ p["w3"] + p["b3"]


if __name__ == "__main__":
    key = jax.random.PRNGKey(0)
    kx, kp = jax.random.split(key)

    batch, in_features = 8, 32
    x = jax.random.normal(kx, (batch, in_features), jnp.float32)
    params = init_params(kp, in_features)
    prepared = prepare_params(params)

    out = jax.block_until_ready(mlp_forward(x, prepared))
    assert out.shape == (batch, 1), out.shape

    # Tight check against a reference that uses the same bf16/f32-acc scheme.
    ref_bf16 = mlp_reference_bf16(x, params)
    assert jnp.allclose(out, ref_bf16, atol=2e-3, rtol=2e-3), "mismatch vs bf16 reference"

    # Loose sanity check against the exact f32 PyTorch-equivalent math.
    ref_f32 = mlp_reference_f32(x, params)
    assert jnp.allclose(out, ref_f32, atol=5e-2, rtol=5e-2), "mismatch vs f32 reference"

    print("KERNEL_OK")
</pallas_src>

<mosaic_0001>
module attributes {stable_mosaic.version = 11 : i64} {
  func.func @mlp_kernel(%arg0: i32, %arg1: memref<128x32xf32, #tpu.memory_space<vmem>>, %arg2: memref<32x128xbf16, #tpu.memory_space<vmem>>, %arg3: memref<1x128xf32, #tpu.memory_space<vmem>>, %arg4: memref<128x128xbf16, #tpu.memory_space<vmem>>, %arg5: memref<128x1xf32, #tpu.memory_space<vmem>>, %arg6: memref<128x1xf32, #tpu.memory_space<vmem>>, %arg7: memref<1x1xf32, #tpu.memory_space<vmem>>, %arg8: memref<1x128xf32, #tpu.memory_space<vmem>>) attributes {dimension_semantics = [#tpu.dimension_semantics<parallel>], iteration_bounds = array<i64: 1>, scalar_prefetch = 0 : i64, scratch_operands = 0 : i64, tpu.core_type = #tpu.core_type<tc>, window_params = [{transform_indices = @transform_0, window_bounds = array<i64: 128, 32>}, {pipeline_mode = #tpu.pipeline_mode<synchronous>, transform_indices = @transform_1, window_bounds = array<i64: 32, 128>}, {pipeline_mode = #tpu.pipeline_mode<synchronous>, transform_indices = @transform_2, window_bounds = array<i64: 1, 128>}, {pipeline_mode = #tpu.pipeline_mode<synchronous>, transform_indices = @transform_3, window_bounds = array<i64: 128, 128>}, {pipeline_mode = #tpu.pipeline_mode<synchronous>, transform_indices = @transform_4, window_bounds = array<i64: 128, 1>}, {pipeline_mode = #tpu.pipeline_mode<synchronous>, transform_indices = @transform_5, window_bounds = array<i64: 128, 1>}, {pipeline_mode = #tpu.pipeline_mode<synchronous>, transform_indices = @transform_6, window_bounds = array<i64: 1, 1>}, {transform_indices = @transform_7, window_bounds = array<i64: 1, 128>}]} {
    %c0 = arith.constant 0 : index
    %c0_0 = arith.constant 0 : index
    %0 = vector.load %arg1[%c0, %c0_0] : memref<128x32xf32, #tpu.memory_space<vmem>>, vector<128x32xf32>
    %1 = arith.truncf %0 : vector<128x32xf32> to vector<128x32xbf16>
    %c0_1 = arith.constant 0 : index
    %c0_2 = arith.constant 0 : index
    %2 = vector.load %arg2[%c0_1, %c0_2] : memref<32x128xbf16, #tpu.memory_space<vmem>>, vector<32x128xbf16>
    %cst = arith.constant dense<0.000000e+00> : vector<128x128xf32>
    %3 = tpu.matmul %1, %2, %cst {dimension_numbers = #tpu.dot_dimension_numbers<[1], [0], [0], [1], [0, 0, 1, 1], [], []>} : vector<128x32xbf16>, vector<32x128xbf16>, vector<128x128xf32> -> vector<128x128xf32>
    %c0_3 = arith.constant 0 : index
    %c0_4 = arith.constant 0 : index
    %4 = vector.load %arg3[%c0_3, %c0_4] : memref<1x128xf32, #tpu.memory_space<vmem>>, vector<1x128xf32>
    %5 = vector.broadcast %4 : vector<1x128xf32> to vector<128x128xf32>
    %6 = arith.addf %3, %5 : vector<128x128xf32>
    %cst_5 = arith.constant 0.000000e+00 : f32
    %7 = vector.broadcast %cst_5 : f32 to vector<128x128xf32>
    %8 = arith.maximumf %6, %7 : vector<128x128xf32>
    %c0_6 = arith.constant 0 : index
    %c0_7 = arith.constant 0 : index
    %9 = vector.load %arg4[%c0_6, %c0_7] : memref<128x128xbf16, #tpu.memory_space<vmem>>, vector<128x128xbf16>
    %10 = arith.truncf %8 : vector<128x128xf32> to vector<128x128xbf16>
    %cst_8 = arith.constant dense<0.000000e+00> : vector<128x128xf32>
    %11 = tpu.matmul %9, %10, %cst_8 {dimension_numbers = #tpu.dot_dimension_numbers<[1], [1], [0], [0], [0, 0, 1, 0], [], []>} : vector<128x128xbf16>, vector<128x128xbf16>, vector<128x128xf32> -> vector<128x128xf32>
    %c0_9 = arith.constant 0 : index
    %c0_10 = arith.constant 0 : index
    %12 = vector.load %arg5[%c0_9, %c0_10] : memref<128x1xf32, #tpu.memory_space<vmem>>, vector<128x1xf32>
    %13 = vector.broadcast %12 : vector<128x1xf32> to vector<128x128xf32>
    %14 = arith.addf %11, %13 : vector<128x128xf32>
    %cst_11 = arith.constant 0.000000e+00 : f32
    %15 = vector.broadcast %cst_11 : f32 to vector<128x128xf32>
    %16 = arith.maximumf %14, %15 : vector<128x128xf32>
    %c0_12 = arith.constant 0 : index
    %c0_13 = arith.constant 0 : index
    %17 = vector.load %arg6[%c0_12, %c0_13] : memref<128x1xf32, #tpu.memory_space<vmem>>, vector<128x1xf32>
    %18 = vector.broadcast %17 : vector<128x1xf32> to vector<128x128xf32>
    %19 = arith.mulf %16, %18 : vector<128x128xf32>
    %cst_14 = arith.constant dense<0.000000e+00> : vector<128xf32>
    %20 = vector.multi_reduction <add>, %19, %cst_14 [0] : vector<128x128xf32> to vector<128xf32>
    %21 = vector.shape_cast %20 : vector<128xf32> to vector<1x128xf32>
    %c0_15 = arith.constant 0 : index
    %c0_16 = arith.constant 0 : index
    %22 = vector.load %arg7[%c0_15, %c0_16] : memref<1x1xf32, #tpu.memory_space<vmem>>, vector<1x1xf32>
    %23 = vector.broadcast %22 : vector<1x1xf32> to vector<1x128xf32>
    %24 = arith.addf %21, %23 : vector<1x128xf32>
    %c0_17 = arith.constant 0 : index
    %c0_18 = arith.constant 0 : index
    %25 = vector.load %arg8[%c0_17, %c0_18] : memref<1x128xf32, #tpu.memory_space<vmem>>, vector<1x128xf32>
    tpu.vector_store %arg8[%c0_17, %c0_18], %24 {strides = array<i32>} : memref<1x128xf32, #tpu.memory_space<vmem>>, vector<1x128xf32>,
    return
  }
  func.func @transform_0(%arg0: i32) -> (i32, i32) {
    %c0_i32 = arith.constant 0 : i32
    %c0_i32_0 = arith.constant 0 : i32
    return %arg0, %c0_i32 : i32, i32
  }
  func.func @transform_1(%arg0: i32) -> (i32, i32) {
    %c0_i32 = arith.constant 0 : i32
    %c0_i32_0 = arith.constant 0 : i32
    %c0_i32_1 = arith.constant 0 : i32
    return %c0_i32, %c0_i32_0 : i32, i32
  }
  func.func @transform_2(%arg0: i32) -> (i32, i32) {
    %c0_i32 = arith.constant 0 : i32
    %c0_i32_0 = arith.constant 0 : i32
    %c0_i32_1 = arith.constant 0 : i32
    return %c0_i32, %c0_i32_0 : i32, i32
  }
  func.func @transform_3(%arg0: i32) -> (i32, i32) {
    %c0_i32 = arith.constant 0 : i32
    %c0_i32_0 = arith.constant 0 : i32
    %c0_i32_1 = arith.constant 0 : i32
    return %c0_i32, %c0_i32_0 : i32, i32
  }
  func.func @transform_4(%arg0: i32) -> (i32, i32) {
    %c0_i32 = arith.constant 0 : i32
    %c0_i32_0 = arith.constant 0 : i32
    %c0_i32_1 = arith.constant 0 : i32
    return %c0_i32, %c0_i32_0 : i32, i32
  }
  func.func @transform_5(%arg0: i32) -> (i32, i32) {
    %c0_i32 = arith.constant 0 : i32
    %c0_i32_0 = arith.constant 0 : i32
    %c0_i32_1 = arith.constant 0 : i32
    return %c0_i32, %c0_i32_0 : i32, i32
  }
  func.func @transform_6(%arg0: i32) -> (i32, i32) {
    %c0_i32 = arith.constant 0 : i32
    %c0_i32_0 = arith.constant 0 : i32
    %c0_i32_1 = arith.constant 0 : i32
    return %c0_i32, %c0_i32_0 : i32, i32
  }
  func.func @transform_7(%arg0: i32) -> (i32, i32) {
    %c0_i32 = arith.constant 0 : i32
    %c0_i32_0 = arith.constant 0 : i32
    return %c0_i32, %arg0 : i32, i32
  }
}

module attributes {stable_mosaic.version = 11 : i64} {
  func.func @mlp_kernel(%arg0: i32, %arg1: memref<128x32xf32, #tpu.memory_space<vmem>>, %arg2: memref<32x128xbf16, #tpu.memory_space<vmem>>, %arg3: memref<1x128xf32, #tpu.memory_space<vmem>>, %arg4: memref<128x128xbf16, #tpu.memory_space<vmem>>, %arg5: memref<128x1xf32, #tpu.memory_space<vmem>>, %arg6: memref<128x1xf32, #tpu.memory_space<vmem>>, %arg7: memref<1x1xf32, #tpu.memory_space<vmem>>, %arg8: memref<1x128xf32, #tpu.memory_space<vmem>>) attributes {dimension_semantics = [#tpu.dimension_semantics<parallel>], iteration_bounds = array<i64: 1>, scalar_prefetch = 0 : i64, scratch_operands = 0 : i64, tpu.core_type = #tpu.core_type<tc>, window_params = [{transform_indices = @transform_0, window_bounds = array<i64: 128, 32>}, {pipeline_mode = #tpu.pipeline_mode<synchronous>, transform_indices = @transform_1, window_bounds = array<i64: 32, 128>}, {pipeline_mode = #tpu.pipeline_mode<synchronous>, transform_indices = @transform_2, window_bounds = array<i64: 1, 128>}, {pipeline_mode = #tpu.pipeline_mode<synchronous>, transform_indices = @transform_3, window_bounds = array<i64: 128, 128>}, {pipeline_mode = #tpu.pipeline_mode<synchronous>, transform_indices = @transform_4, window_bounds = array<i64: 128, 1>}, {pipeline_mode = #tpu.pipeline_mode<synchronous>, transform_indices = @transform_5, window_bounds = array<i64: 128, 1>}, {pipeline_mode = #tpu.pipeline_mode<synchronous>, transform_indices = @transform_6, window_bounds = array<i64: 1, 1>}, {transform_indices = @transform_7, window_bounds = array<i64: 1, 128>}]} {
    %c0 = arith.constant 0 : index
    %c0_0 = arith.constant 0 : index
    %0 = vector.load %arg1[%c0, %c0_0] : memref<128x32xf32, #tpu.memory_space<vmem>>, vector<128x32xf32>
    %1 = arith.truncf %0 : vector<128x32xf32> to vector<128x32xbf16>
    %c0_1 = arith.constant 0 : index
    %c0_2 = arith.constant 0 : index
    %2 = vector.load %arg2[%c0_1, %c0_2] : memref<32x128xbf16, #tpu.memory_space<vmem>>, vector<32x128xbf16>
    %cst = arith.constant dense<0.000000e+00> : vector<128x128xf32>
    %3 = tpu.matmul %1, %2, %cst {dimension_numbers = #tpu.dot_dimension_numbers<[1], [0], [0], [1], [0, 0, 1, 1], [], []>} : vector<128x32xbf16>, vector<32x128xbf16>, vector<128x128xf32> -> vector<128x128xf32>
    %c0_3 = arith.constant 0 : index
    %c0_4 = arith.constant 0 : index
    %4 = vector.load %arg3[%c0_3, %c0_4] : memref<1x128xf32, #tpu.memory_space<vmem>>, vector<1x128xf32>
    %5 = vector.broadcast %4 : vector<1x128xf32> to vector<128x128xf32>
    %6 = arith.addf %3, %5 : vector<128x128xf32>
    %cst_5 = arith.constant 0.000000e+00 : f32
    %7 = vector.broadcast %cst_5 : f32 to vector<128x128xf32>
    %8 = arith.maximumf %6, %7 : vector<128x128xf32>
    %c0_6 = arith.constant 0 : index
    %c0_7 = arith.constant 0 : index
    %9 = vector.load %arg4[%c0_6, %c0_7] : memref<128x128xbf16, #tpu.memory_space<vmem>>, vector<128x128xbf16>
    %10 = arith.truncf %8 : vector<128x128xf32> to vector<128x128xbf16>
    %cst_8 = arith.constant dense<0.000000e+00> : vector<128x128xf32>
    %11 = tpu.matmul %9, %10, %cst_8 {dimension_numbers = #tpu.dot_dimension_numbers<[1], [1], [0], [0], [0, 0, 1, 0], [], []>} : vector<128x128xbf16>, vector<128x128xbf16>, vector<128x128xf32> -> vector<128x128xf32>
    %c0_9 = arith.constant 0 : index
    %c0_10 = arith.constant 0 : index
    %12 = vector.load %arg5[%c0_9, %c0_10] : memref<128x1xf32, #tpu.memory_space<vmem>>, vector<128x1xf32>
    %13 = vector.broadcast %12 : vector<128x1xf32> to vector<128x128xf32>
    %14 = arith.addf %11, %13 : vector<128x128xf32>
    %cst_11 = arith.constant 0.000000e+00 : f32
    %15 = vector.broadcast %cst_11 : f32 to vector<128x128xf32>
    %16 = arith.maximumf %14, %15 : vector<128x128xf32>
    %c0_12 = arith.constant 0 : index
    %c0_13 = arith.constant 0 : index
    %17 = vector.load %arg6[%c0_12, %c0_13] : memref<128x1xf32, #tpu.memory_space<vmem>>, vector<128x1xf32>
    %18 = vector.broadcast %17 : vector<128x1xf32> to vector<128x128xf32>
    %19 = arith.mulf %16, %18 : vector<128x128xf32>
    %cst_14 = arith.constant dense<0.000000e+00> : vector<128xf32>
    %20 = vector.multi_reduction <add>, %19, %cst_14 [0] : vector<128x128xf32> to vector<128xf32>
    %21 = vector.shape_cast %20 : vector<128xf32> to vector<1x128xf32>
    %c0_15 = arith.constant 0 : index
    %c0_16 = arith.constant 0 : index
    %22 = vector.load %arg7[%c0_15, %c0_16] : memref<1x1xf32, #tpu.memory_space<vmem>>, vector<1x1xf32>
    %23 = vector.broadcast %22 : vector<1x1xf32> to vector<1x128xf32>
    %24 = arith.addf %21, %23 : vector<1x128xf32>
    %c0_17 = arith.constant 0 : index
    %c0_18 = arith.constant 0 : index
    %25 = vector.load %arg8[%c0_17, %c0_18] : memref<1x128xf32, #tpu.memory_space<vmem>>, vector<1x128xf32>
    tpu.vector_store %arg8[%c0_17, %c0_18], %24 {strides = array<i32>} : memref<1x128xf32, #tpu.memory_space<vmem>>, vector<1x128xf32>,
    return
  }
  func.func @transform_0(%arg0: i32) -> (i32, i32) {
    %c0_i32 = arith.constant 0 : i32
    %c0_i32_0 = arith.constant 0 : i32
    return %arg0, %c0_i32 : i32, i32
  }
  func.func @transform_1(%arg0: i32) -> (i32, i32) {
    %c0_i32 = arith.constant 0 : i32
    %c0_i32_0 = arith.constant 0 : i32
    %c0_i32_1 = arith.constant 0 : i32
    return %c0_i32, %c0_i32_0 : i32, i32
  }
  func.func @transform_2(%arg0: i32) -> (i32, i32) {
    %c0_i32 = arith.constant 0 : i32
    %c0_i32_0 = arith.constant 0 : i32
    %c0_i32_1 = arith.constant 0 : i32
    return %c0_i32, %c0_i32_0 : i32, i32
  }
  func.func @transform_3(%arg0: i32) -> (i32, i32) {
    %c0_i32 = arith.constant 0 : i32
    %c0_i32_0 = arith.constant 0 : i32
    %c0_i32_1 = arith.constant 0 : i32
    return %c0_i32, %c0_i32_0 : i32, i32
  }
  func.func @transform_4(%arg0: i32) -> (i32, i32) {
    %c0_i32 = arith.constant 0 : i32
    %c0_i32_0 = arith.constant 0 : i32
    %c0_i32_1 = arith.constant 0 : i32
    return %c0_i32, %c0_i32_0 : i32, i32
  }
  func.func @transform_5(%arg0: i32) -> (i32, i32) {
    %c0_i32 = arith.constant 0 : i32
    %c0_i32_0 = arith.constant 0 : i32
    %c0_i32_1 = arith.constant 0 : i32
    return %c0_i32, %c0_i32_0 : i32, i32
  }
  func.func @transform_6(%arg0: i32) -> (i32, i32) {
    %c0_i32 = arith.constant 0 : i32
    %c0_i32_0 = arith.constant 0 : i32
    %c0_i32_1 = arith.constant 0 : i32
    return %c0_i32, %c0_i32_0 : i32, i32
  }
  func.func @transform_7(%arg0: i32) -> (i32, i32) {
    %c0_i32 = arith.constant 0 : i32
    %c0_i32_0 = arith.constant 0 : i32
    return %c0_i32, %arg0 : i32, i32
  }
}

</mosaic_0001>

<bundles_post_ra>
// kernel: tpu_custom_call.1
= control target key start
LH: loop header
LB: loop body
LE: loop exit
PB: predicated region body
PF: predicated region fallthrough
CT: control target
= control target key end

     0   :  { %s1067_s0 = inlined_call_operand.vmem [shape: f32[128,32], index: 0, kind: input, shape index: {}]   ;;  %s1068_s1 = inlined_call_operand.vmem [shape: bf16[32,128], index: 1, kind: input, shape index: {}]   ;;  %s1069_s2 = inlined_call_operand.vmem [shape: f32[1,128], index: 2, kind: input, shape index: {}]   ;;  %s1070_s3 = inlined_call_operand.vmem [shape: bf16[128,128], index: 3, kind: input, shape index: {}]   ;;  %s1071_s4 = inlined_call_operand.vmem [shape: f32[128,1], index: 4, kind: input, shape index: {}]   ;;  %s1072_s5 = inlined_call_operand.vmem [shape: f32[128,1], index: 5, kind: input, shape index: {}]   ;;  %s1073_s6 = inlined_call_operand.<no memory space> [shape: f32[1,1], index: 6, kind: input, shape index: {}]   ;;  %s1074_s7 = inlined_call_operand.hbm [shape: f32[1,128], index: 7, kind: output, shape index: {}]  }
   0x1   :  { %v12_v0 = vstv %s1073_s6 }
   0x2   :  { %13 = vst [vmem:[#allocation2] sm:$0x1] %v12_v0 }
   0x3   :  { %v772_v1 = vld [vmem:[%s1068_s1 + $0x8] sm:$0xff]   ;;  %v773_v2 = vld [vmem:[%s1068_s1] sm:$0xff]   ;;  %vm77_vm0 = vcmask 261120   ;;  %v32_v6 = vld [vmem:[%s1067_s0 + $0x10] sm:$0xff] }
   0x4   :  { %700 = vmatprep.subr.bf16.mxu0 %v772_v1  ;;  %v30_v3 = vld [vmem:[%s1067_s0] sm:$0xff]  ;;  %v31_v4 = vld [vmem:[%s1067_s0 + $0x8] sm:$0xff]  ;;  %v33_v7 = vld [vmem:[%s1067_s0 + $0x18] sm:$0xff] }
   0x5   :  { %701 = vmatpush3.bf16.msra.mxu0 %v772_v1  ;;  %v46_v5 = vpack.c.bf16 %v31_v4, %v30_v3  ;;  %v34_v8 = vld [vmem:[%s1067_s0 + $0x20] sm:$0xff]  ;;  %v35_v9 = vld [vmem:[%s1067_s0 + $0x28] sm:$0xff]  ;;  %v47_v10 = vpack.c.bf16 %v33_v7, %v32_v6  ;;  %v36_v12 = vld [vmem:[%s1067_s0 + $0x30] sm:$0xff] }
   0x6   :  { %702 = vmatprep.subr.bf16.mxu0 %v773_v2  ;;  %v48_v11 = vpack.c.bf16 %v35_v9, %v34_v8  ;;  %v37_v13 = vld [vmem:[%s1067_s0 + $0x38] sm:$0xff]  ;;  %v38_v14 = vld [vmem:[%s1067_s0 + $0x40] sm:$0xff]  ;;  %v39_v15 = vld [vmem:[%s1067_s0 + $0x48] sm:$0xff] }
   0x7   :  { %704 = vmatprep.mubr.msk.bf16.mxu0 %vm77_vm0, %v46_v5 }
   0x9   :  { %703 = vmatpush3.bf16.msra.mxu0 %v773_v2 }
   0xc   :  { %705 = vmatmul.mubr.msk.bf16.vlgmr.msra.gmra.mxu0 %vm77_vm0, %v47_v10 }
   0xd   :  { %708 = vmatprep.mubr.msk.bf16.mxu0 %vm77_vm0, %v48_v11 }
   0xe   :  { %14 = vsyncpa [#allocation4], 0  ;;  %v49_v16 = vpack.c.bf16 %v37_v13, %v36_v12  ;;  %v50_v17 = vpack.c.bf16 %v39_v15, %v38_v14  ;;  %v40_v18 = vld [vmem:[%s1067_s0 + $0x50] sm:$0xff]  ;;  %v41_v19 = vld [vmem:[%s1067_s0 + $0x58] sm:$0xff]  ;;  %v804_v28 = vmov 0  }
   0xf   :  { %v42_v20 = vld [vmem:[%s1067_s0 + $0x60] sm:$0xff]  ;;  %v43_v21 = vld [vmem:[%s1067_s0 + $0x68] sm:$0xff]  ;;  %v51_v22 = vpack.c.bf16 %v41_v19, %v40_v18  ;;  %v44_v24 = vld [vmem:[%s1067_s0 + $0x70] sm:$0xff]  ;;  %770 = vset.pattern.permute.xlu0 %v804_v28  ;;  %771 = vset.pattern.permute.xlu1 %v804_v28 }
  0x10   :  { %v52_v23 = vpack.c.bf16 %v43_v21, %v42_v20  ;;  %v45_v25 = vld [vmem:[%s1067_s0 + $0x78] sm:$0xff]  ;;  %v239_v27 = vld [vmem:[%s1071_s4] sm:$0xff]  ;;  %v240_v29 = vld [vmem:[%s1071_s4 + $0x8] sm:$0xff] }
  0x11   :  { %v53_v26 = vpack.c.bf16 %v45_v25, %v44_v24  ;;  %257 = vperm.xlu0 %770, %v239_v27   ;;  %v241_v30 = vld [vmem:[%s1071_s4 + $0x10] sm:$0xff]  ;;  %v243_v31 = vld [vmem:[%s1071_s4 + $0x20] sm:$0xff]  ;;  %v242_v32 = vld [vmem:[%s1071_s4 + $0x18] sm:$0xff] }
  0x12   :  { %267 = vperm.xlu1 %771, %v241_v30   ;;  %v496_v33 = vld [vmem:[%s1072_s5] sm:$0xff]  ;;  %v244_v34 = vld [vmem:[%s1071_s4 + $0x28] sm:$0xff]  ;;  %v498_v35 = vld [vmem:[%s1072_s5 + $0x10] sm:$0xff] }
  0x13   :  { %v774_v36 = vld [vmem:[%s1070_s3] sm:$0xff]   ;;  %v775_v37 = vld [vmem:[%s1070_s3 + $0x10] sm:$0xff]   ;;  %v497_v38 = vld [vmem:[%s1072_s5 + $0x8] sm:$0xff] }
  0x14   :  { %709 = vmatmul.mubr.msk.bf16.gmra.mxu0 %vm77_vm0, %v49_v16  ;;  %740 = vmatprep.mubr.bf16.mxu1 %v775_v37  ;;  %v245_v39 = vld [vmem:[%s1071_s4 + $0x30] sm:$0xff]  ;;  %v499_v40 = vld [vmem:[%s1072_s5 + $0x18] sm:$0xff]  ;;  %v500_v42 = vld [vmem:[%s1072_s5 + $0x20] sm:$0xff] }
  0x15   :  { %712 = vmatprep.mubr.msk.bf16.mxu0 %vm77_vm0, %v50_v17  ;;  %262 = vperm.xlu0 %770, %v240_v29   ;;  %v246_v41 = vld [vmem:[%s1071_s4 + $0x38] sm:$0xff]  ;;  %v247_v43 = vld [vmem:[%s1071_s4 + $0x40] sm:$0xff]  ;;  %v501_v44 = vld [vmem:[%s1072_s5 + $0x28] sm:$0xff] }
  0x16   :  { %272 = vperm.xlu1 %771, %v242_v32   ;;  %v248_v45 = vld [vmem:[%s1071_s4 + $0x48] sm:$0xff]  ;;  %v502_v46 = vld [vmem:[%s1072_s5 + $0x30] sm:$0xff]  ;;  %v503_v48 = vld [vmem:[%s1072_s5 + $0x38] sm:$0xff] }
  0x17   :  { %v249_v47 = vld [vmem:[%s1071_s4 + $0x50] sm:$0xff]  ;;  %v250_v49 = vld [vmem:[%s1071_s4 + $0x58] sm:$0xff]  ;;  %v504_v50 = vld [vmem:[%s1072_s5 + $0x40] sm:$0xff] }
  0x18   :  { %v251_v51 = vld [vmem:[%s1071_s4 + $0x60] sm:$0xff]  ;;  %v505_v52 = vld [vmem:[%s1072_s5 + $0x48] sm:$0xff]  ;;  %v506_v54 = vld [vmem:[%s1072_s5 + $0x50] sm:$0xff] }
  0x19   :  { %277 = vperm.xlu0 %770, %v243_v31   ;;  %v252_v53 = vld [vmem:[%s1071_s4 + $0x68] sm:$0xff]  ;;  %v995_v56 = vld [vmem:[%s1069_s2] ss:$0 sm:$0xff]  ;;  %v253_v57 = vld [vmem:[%s1071_s4 + $0x70] sm:$0xff] }
  0x1a   :  { %282 = vperm.xlu1 %771, %v244_v34   ;;  %v507_v60 = vld [vmem:[%s1072_s5 + $0x58] sm:$0xff]  ;;  %v508_v5 = vld [vmem:[%s1072_s5 + $0x60] sm:$0xff]  ;;  %v510_v10 = vld [vmem:[%s1072_s5 + $0x70] sm:$0xff] }
  0x1b   :  { %v254_v0 = vld [vmem:[%s1071_s4 + $0x78] sm:$0xff]  ;;  %v509_v13 = vld [vmem:[%s1072_s5 + $0x68] sm:$0xff]  ;;  %v629_v15 = vld [vmem:[#allocation2] sm:$0x1] }
  0x1c   :  { %713 = vmatmul.mubr.msk.bf16.gmra.mxu0 %vm77_vm0, %v51_v22  ;;  %v511_v17 = vld [vmem:[%s1072_s5 + $0x78] sm:$0xff] }
  0x1d   :  { %716 = vmatprep.mubr.msk.bf16.mxu0 %vm77_vm0, %v52_v23  ;;  %514 = vperm.xlu0 %770, %v496_v33  }
  0x1e   :  { %519 = vperm.xlu1 %771, %v497_v38  }
  0x21   :  { %524 = vperm.xlu0 %770, %v498_v35  }
  0x22   :  { %529 = vperm.xlu1 %771, %v499_v40  }
  0x24   :  { %717 = vmatmul.mubr.msk.bf16.gmra.mxu0 %vm77_vm0, %v53_v26 }
  0x25   :  { %736 = vmatprep.mubr.bf16.mxu0 %v774_v36  ;;  %287 = vperm.xlu0 %770, %v245_v39  }
  0x26   :  { %534 = vperm.xlu1 %771, %v500_v42  }
  0x29   :  { %292 = vperm.xlu0 %770, %v246_v41  }
  0x2a   :  { %539 = vperm.xlu1 %771, %v501_v44  }
  0x2d   :  { %297 = vperm.xlu0 %770, %v247_v43  }
  0x2e   :  { %544 = vperm.xlu1 %771, %v502_v46  }
  0x31   :  { %302 = vperm.xlu0 %770, %v248_v45  }
  0x32   :  { %549 = vperm.xlu1 %771, %v503_v48  }
  0x35   :  { %307 = vperm.xlu0 %770, %v249_v47  }
  0x36   :  { %554 = vperm.xlu1 %771, %v504_v50  }
  0x39   :  { %312 = vperm.xlu0 %770, %v250_v49  }
  0x3a   :  { %559 = vperm.xlu1 %771, %v505_v52  }
  0x3d   :  { %317 = vperm.xlu0 %770, %v251_v51  }
  0x3e   :  { %564 = vperm.xlu1 %771, %v506_v54  }
  0x41   :  { %322 = vperm.xlu0 %770, %v252_v53  }
  0x42   :  { %569 = vperm.xlu1 %771, %v507_v60   ;;  %v780_v60 = vld [vmem:[%s1070_s3 + $0x30] sm:$0xff]  }
  0x45   :  { %327 = vperm.xlu0 %770, %v253_v57   ;;  %v777_v57 = vld [vmem:[%s1070_s3 + $0x18] sm:$0xff]  }
  0x46   :  { %574 = vperm.xlu1 %771, %v508_v5  }
  0x49   :  { %332 = vperm.xlu0 %770, %v254_v0  }
  0x4a   :  { %579 = vperm.xlu1 %771, %v509_v13  }
  0x4d   :  { %584 = vperm.xlu0 %770, %v510_v10  }
  0x4e   :  { %589 = vperm.xlu1 %771, %v511_v17  }
  0x51   :  { %632 = vperm.xlu0 %770, %v629_v15  }
  0xcc   :  { %v706_v55 = vpop.f32.mrf.mxu0 }
  0xcd   :  { %v145_v59 = vadd.f32 %v706_v55, %v995_v56 }
  0xce   :  { %v136_v58 = vpop.f32.mrf.mxu0 }
  0xcf   :  { %v137_v62 = vadd.f32 %v995_v56, %v136_v58  ;;  %v201_v2 = vmax.f32 %v145_v59, 0.0  ;;  %v778_v58 = vld [vmem:[%s1070_s3 + $0x20] sm:$0xff]   ;;  %v779_v59 = vld [vmem:[%s1070_s3 + $0x28] sm:$0xff]  }
  0xd0   :  { %v707_v61 = vpop.f32.mrf.mxu0 }
  0xd1   :  { %v148_v63 = vadd.f32 %v707_v61, %v995_v56  ;;  %v199_v7 = vmax.f32 %v137_v62, 0.0  ;;  %v781_v61 = vld [vmem:[%s1070_s3 + $0x38] sm:$0xff]   ;;  %v258_v62 = vpop.permute.xlu0 %257 }
  0xd2   :  { %v139_v1 = vpop.f32.mrf.mxu0 }
  0xd3   :  { %v202_v3 = vmax.f32 %v148_v63, 0.0  ;;  %v140_v4 = vadd.f32 %v995_v56, %v139_v1  ;;  %v268_v63 = vpop.permute.xlu1 %267 }
  0xd4   :  { %v710_v6 = vpop.f32.mrf.mxu0 }
  0xd5   :  { %v1013_v8 = vpack.c.bf16 %v202_v3, %v201_v2  ;;  %v200_v9 = vmax.f32 %v140_v4, 0.0  ;;  %v161_v47 = vadd.f32 %v710_v6, %v995_v56  ;;  %v263_v0 = vpop.permute.xlu0 %262 }
  0xd6   :  { %v152_v11 = vpop.f32.mrf.mxu0 }
  0xd7   :  { %v1018_v12 = vpack.c.bf16 %v200_v9, %v199_v7  ;;  %v205_v49 = vmax.f32 %v161_v47, 0.0  ;;  %v153_v52 = vadd.f32 %v995_v56, %v152_v11  ;;  %v273_v1 = vpop.permute.xlu1 %272 }
  0xd8   :  { %v711_v14 = vpop.f32.mrf.mxu0 }
  0xd9   :  { %v164_v45 = vadd.f32 %v711_v14, %v995_v56  ;;  %v203_v54 = vmax.f32 %v153_v52, 0.0  ;;  %v278_v2 = vpop.permute.xlu0 %277 }
  0xda   :  { %v155_v16 = vpop.f32.mrf.mxu0 }
  0xdb   :  { %v206_v48 = vmax.f32 %v164_v45, 0.0  ;;  %v156_v51 = vadd.f32 %v995_v56, %v155_v16  ;;  %v283_v3 = vpop.permute.xlu1 %282 }
  0xdc   :  { %v714_v18 = vpop.f32.mrf.mxu0 }
  0xdd   :  { %v177_v37 = vadd.f32 %v714_v18, %v995_v56  ;;  %v234_v50 = vpack.c.bf16 %v206_v48, %v205_v49  ;;  %v204_v53 = vmax.f32 %v156_v51, 0.0  ;;  %v515_v4 = vpop.permute.xlu0 %514 }
  0xde   :  { %v168_v19 = vpop.f32.mrf.mxu0 }
  0xdf   :  { %v209_v39 = vmax.f32 %v177_v37, 0.0  ;;  %v169_v42 = vadd.f32 %v995_v56, %v168_v19  ;;  %v233_v55 = vpack.c.bf16 %v204_v53, %v203_v54  ;;  %v520_v5 = vpop.permute.xlu1 %519 }
  0xe0   :  { %v715_v20 = vpop.f32.mrf.mxu0 }
  0xe1   :  { %v180_v35 = vadd.f32 %v715_v20, %v995_v56  ;;  %v207_v44 = vmax.f32 %v169_v42, 0.0  ;;  %v525_v6 = vpop.permute.xlu0 %524 }
  0xe2   :  { %v171_v21 = vpop.f32.mrf.mxu0 }
  0xe3   :  { %v210_v38 = vmax.f32 %v180_v35, 0.0  ;;  %v172_v41 = vadd.f32 %v995_v56, %v171_v21  ;;  %v530_v7 = vpop.permute.xlu1 %529 }
  0xe4   :  { %v718_v22 = vpop.f32.mrf.mxu0 }
  0xe5   :  { %v193_v24 = vadd.f32 %v718_v22, %v995_v56  ;;  %v236_v40 = vpack.c.bf16 %v210_v38, %v209_v39  ;;  %v208_v43 = vmax.f32 %v172_v41, 0.0 }
  0xe6   :  { %v184_v23 = vpop.f32.mrf.mxu0 }
  0xe7   :  { %v185_v26 = vadd.f32 %v995_v56, %v184_v23  ;;  %v213_v29 = vmax.f32 %v193_v24, 0.0  ;;  %v235_v46 = vpack.c.bf16 %v208_v43, %v207_v44  ;;  %v535_v9 = vpop.permute.xlu1 %534 }
  0xe8   :  { %v719_v25 = vpop.f32.mrf.mxu0 }
  0xe9   :  { %v196_v27 = vadd.f32 %v719_v25, %v995_v56  ;;  %v211_v32 = vmax.f32 %v185_v26, 0.0 }
  0xea   :  { %v187_v28 = vpop.f32.mrf.mxu0 }
  0xeb   :  { %v214_v30 = vmax.f32 %v196_v27, 0.0  ;;  %v188_v31 = vadd.f32 %v995_v56, %v187_v28  ;;  %v776_v56 = vld [vmem:[%s1070_s3 + $0x8] sm:$0xff]   ;;  %v540_v11 = vpop.permute.xlu1 %539  ;;  %s805_s3 = smov [#allocation3]  }
  0xec   :  { %s647_s1 = sshll.u32 %s805_s3, 4  ;;  %s648_s1 = int_to_ptr.vmem [resolvable:$true] %s647_s1 }
  0xed   :  { %v238_v33 = vpack.c.bf16 %v214_v30, %v213_v29  ;;  %v212_v34 = vmax.f32 %v188_v31, 0.0  ;;  %s782_s14 = scalar_lea.vmem %s648_s1, 16  ;;  %s786_s15 = scalar_lea.vmem %s648_s1, 32 }
  0xee   :  { %p783_p0 = scmp.ne.s32.totalorder %s648_s1, %s782_s14  ;;  %p787_p1 = scmp.lt.s32.totalorder %s648_s1, %s648_s1 }
  0xef   :  { %v237_v36 = vpack.c.bf16 %v212_v34, %v211_v32  ;;  %720 = vmatprep.subr.bf16.mxu0 %v238_v33  ;;  %752 = vmatprep.subr.bf16.mxu1 %v238_v33  ;;  %v545_v13 = vpop.permute.xlu1 %544  ;;  %p788_p2 = scmp.lt.s32.totalorder %s786_s15, %s782_s14 }
  0xf0   :  { %721 = vmatpush3.bf16.xpose.msra.mxu0 %v238_v33  ;;  %760 = vmatpush3.bf16.xpose.msra.mxu1 %v238_v33 }
  0xf1   :  { %722 = vmatprep.subr.bf16.mxu0 %v237_v36  ;;  %753 = vmatprep.subr.bf16.mxu1 %v237_v36  ;;  %p789_p3 = por %p788_p2, %p787_p1 }
  0xf3   :  { %v550_v15 = vpop.permute.xlu1 %549  ;;  %p790_p4 = pnand %p789_p3, %p783_p0 }
  0xf7   :  { %v555_v19 = vpop.permute.xlu1 %554 }
  0xf8   :  { %723 = vmatpush3.bf16.xpose.msra.mxu0 %v237_v36  ;;  %761 = vmatpush3.bf16.xpose.msra.mxu1 %v237_v36 }
  0xf9   :  { %724 = vmatprep.subr.bf16.mxu0 %v236_v40  ;;  %754 = vmatprep.subr.bf16.mxu1 %v236_v40 }
  0xfb   :  { %v560_v32 = vpop.permute.xlu1 %559 }
  0xff   :  { %v565_v48 = vpop.permute.xlu1 %564 }
 0x100   :  { %725 = vmatpush3.bf16.xpose.msra.mxu0 %v236_v40  ;;  %762 = vmatpush3.bf16.xpose.msra.mxu1 %v236_v40 }
 0x101   :  { %726 = vmatprep.subr.bf16.mxu0 %v235_v46  ;;  %755 = vmatprep.subr.bf16.mxu1 %v235_v46 }
 0x108   :  { %727 = vmatpush3.bf16.xpose.msra.mxu0 %v235_v46  ;;  %763 = vmatpush3.bf16.xpose.msra.mxu1 %v235_v46 }
 0x109   :  { %728 = vmatprep.subr.bf16.mxu0 %v234_v50  ;;  %756 = vmatprep.subr.bf16.mxu1 %v234_v50 }
 0x110   :  { %729 = vmatpush3.bf16.xpose.msra.mxu0 %v234_v50  ;;  %764 = vmatpush3.bf16.xpose.msra.mxu1 %v234_v50 }
 0x111   :  { %730 = vmatprep.subr.bf16.mxu0 %v233_v55  ;;  %757 = vmatprep.subr.bf16.mxu1 %v233_v55 }
 0x118   :  { %731 = vmatpush3.bf16.xpose.msra.mxu0 %v233_v55  ;;  %765 = vmatpush3.bf16.xpose.msra.mxu1 %v233_v55 }
 0x119   :  { %732 = vmatprep.subr.bf16.mxu0 %v1013_v8  ;;  %758 = vmatprep.subr.bf16.mxu1 %v1013_v8 }
 0x120   :  { %733 = vmatpush3.bf16.xpose.msra.mxu0 %v1013_v8  ;;  %766 = vmatpush3.bf16.xpose.msra.mxu1 %v1013_v8  ;;  %v288_v8 = vpop.permute.xlu0 %287 }
 0x121   :  { %734 = vmatprep.subr.bf16.mxu0 %v1018_v12  ;;  %759 = vmatprep.subr.bf16.mxu1 %v1018_v12 }
 0x124   :  { %v293_v10 = vpop.permute.xlu0 %292 }
 0x128   :  { %735 = vmatpush3.bf16.xpose.msra.mxu0 %v1018_v12  ;;  %767 = vmatpush3.bf16.xpose.msra.mxu1 %v1018_v12  ;;  %v298_v12 = vpop.permute.xlu0 %297 }
 0x12c   :  { %v303_v14 = vpop.permute.xlu0 %302 }
 0x12f   :  { %737 = vmatmul.mubr.bf16.vlgmr.msra.gmra.mxu0 %v776_v56  ;;  %741 = vmatmul.mubr.bf16.vlgmr.msra.gmra.mxu1 %v777_v57 }
 0x130   :  { %744 = vmatprep.mubr.bf16.mxu1 %v778_v58  ;;  %v308_v16 = vpop.permute.xlu0 %307 }
 0x134   :  { %v313_v25 = vpop.permute.xlu0 %312 }
 0x137   :  { %745 = vmatmul.mubr.bf16.gmra.mxu1 %v779_v59 }
 0x138   :  { %748 = vmatprep.mubr.bf16.mxu1 %v780_v60  ;;  %v318_v42 = vpop.permute.xlu0 %317 }
 0x13c   :  { %v323_v59 = vpop.permute.xlu0 %322 }
 0x13f   :  { %749 = vmatmul.mubr.bf16.gmra.mxu1 %v781_v61 }
 0x1ef   :  { %v738_v17 = vpop.f32.mrf.mxu0  ;;  %v742_v18 = vpop.f32.mrf.mxu1 }
 0x1f0   :  { %v426_v26 = vadd.f32 %v738_v17, %v268_v63  ;;  %v442_v45 = vadd.f32 %v742_v18, %v288_v8  ;;  %v328_v18 = vpop.permute.xlu0 %327 }
 0x1f1   :  { %v417_v20 = vpop.f32.mrf.mxu0  ;;  %v433_v21 = vpop.f32.mrf.mxu1 }
 0x1f2   :  { %v418_v22 = vadd.f32 %v417_v20, %v258_v62  ;;  %v482_v34 = vmax.f32 %v426_v26, 0.0  ;;  %v434_v35 = vadd.f32 %v433_v21, %v278_v2  ;;  %v486_v55 = vmax.f32 %v442_v45, 0.0 }
 0x1f3   :  { %v739_v23 = vpop.f32.mrf.mxu0  ;;  %v743_v24 = vpop.f32.mrf.mxu1 }
 0x1f4   :  { %v480_v29 = vmax.f32 %v418_v22, 0.0  ;;  %v429_v30 = vadd.f32 %v739_v23, %v273_v1  ;;  %v594_v44 = vmul.f32 %v525_v6, %v482_v34  ;;  %v484_v46 = vmax.f32 %v434_v35, 0.0  ;;  %v570_v1 = vpop.permute.xlu1 %569 }
 0x1f5   :  { %v420_v27 = vpop.f32.mrf.mxu0  ;;  %v436_v28 = vpop.f32.mrf.mxu1  ;;  %v445_v51 = vadd.f32 %v743_v24, %v293_v10 }
 0x1f6   :  { %v421_v31 = vadd.f32 %v420_v27, %v263_v0  ;;  %v592_v38 = vmul.f32 %v515_v4, %v480_v29  ;;  %v483_v39 = vmax.f32 %v429_v30, 0.0  ;;  %v437_v41 = vadd.f32 %v436_v28, %v283_v3  ;;  %v333_v29 = vpop.permute.xlu0 %332 }
 0x1f7   :  { %v746_v33 = vpop.f32.mrf.mxu1  ;;  %v596_v56 = vmul.f32 %v535_v9, %v484_v46  ;;  %v487_v61 = vmax.f32 %v445_v51, 0.0  ;;  %v598_v3 = vmul.f32 %v545_v13, %v486_v55 }
 0x1f8   :  { %v481_v36 = vmax.f32 %v421_v31, 0.0  ;;  %v595_v50 = vmul.f32 %v530_v7, %v483_v39  ;;  %v485_v53 = vmax.f32 %v437_v41, 0.0  ;;  %v575_v23 = vpop.permute.xlu1 %574 }
 0x1f9   :  { %v449_v37 = vpop.f32.mrf.mxu1  ;;  %v599_v7 = vmul.f32 %v550_v15, %v487_v61 }
 0x1fa   :  { %v593_v40 = vmul.f32 %v520_v5, %v481_v36  ;;  %v450_v58 = vadd.f32 %v449_v37, %v298_v12  ;;  %v597_v62 = vmul.f32 %v540_v11, %v485_v53  ;;  %v458_v5 = vadd.f32 %v746_v33, %v308_v16  ;;  %v585_v39 = vpop.permute.xlu0 %584 }
 0x1fb   :  { %v747_v43 = vpop.f32.mrf.mxu1 }
 0x1fc   :  { %v608_v47 = vadd.f32 %v593_v40, %v592_v38  ;;  %v488_v6 = vmax.f32 %v450_v58, 0.0  ;;  %v461_v10 = vadd.f32 %v747_v43, %v313_v25  ;;  %v490_v20 = vmax.f32 %v458_v5, 0.0  ;;  %v580_v33 = vpop.permute.xlu1 %579 }
 0x1fd   :  { %v452_v49 = vpop.f32.mrf.mxu1 }
 0x1fe   :  { %v609_v52 = vadd.f32 %v608_v47, %v594_v44  ;;  %v453_v0 = vadd.f32 %v452_v49, %v303_v14  ;;  %v600_v12 = vmul.f32 %v555_v19, %v488_v6  ;;  %v491_v24 = vmax.f32 %v461_v10, 0.0 }
 0x1ff   :  { %v750_v54 = vpop.f32.mrf.mxu1  ;;  %v602_v27 = vmul.f32 %v565_v48, %v490_v20  ;;  %v635_v44 = vlaneseq }
 0x200   :  { %v610_v57 = vadd.f32 %v609_v52, %v595_v50  ;;  %v489_v17 = vmax.f32 %v453_v0, 0.0  ;;  %v474_v28 = vadd.f32 %v750_v54, %v328_v18  ;;  %v603_v15 = vmul.f32 %v570_v1, %v491_v24  ;;  %v590_v41 = vpop.permute.xlu1 %589  ;;  %v633_v52 = vpop.permute.xlu0 %632 }
 0x201   :  { %v465_v60 = vpop.f32.mrf.mxu1  ;;  %v636_v47 = vshrl.u32 %v635_v44, 7 }
 0x202   :  { %v611_v63 = vadd.f32 %v610_v57, %v596_v56  ;;  %v466_v22 = vadd.f32 %v465_v60, %v318_v42  ;;  %v601_v14 = vmul.f32 %v560_v32, %v489_v17  ;;  %v494_v34 = vmax.f32 %v474_v28, 0.0 }
 0x203   :  { %v751_v2 = vpop.f32.mrf.mxu1  ;;  %v637_v50 = vsub.s32 0, %v636_v47 }
 0x204   :  { %v612_v4 = vadd.f32 %v611_v63, %v597_v62  ;;  %v492_v16 = vmax.f32 %v466_v22, 0.0  ;;  %v477_v25 = vadd.f32 %v751_v2, %v333_v29  ;;  %v606_v40 = vmul.f32 %v585_v39, %v494_v34 }
 0x205   :  { %v468_v9 = vpop.f32.mrf.mxu1  ;;  %v638_v54 = vrot.slane %v633_v52, %v637_v50 }
 0x206   :  { %v613_v8 = vadd.f32 %v612_v4, %v598_v3  ;;  %v469_v26 = vadd.f32 %v468_v9, %v323_v59  ;;  %v604_v35 = vmul.f32 %v575_v23, %v492_v16  ;;  %v495_v37 = vmax.f32 %v477_v25, 0.0 }
 0x208   :  { %v614_v21 = vadd.f32 %v613_v8, %v599_v7  ;;  %v493_v31 = vmax.f32 %v469_v26, 0.0  ;;  %v607_v42 = vmul.f32 %v590_v41, %v495_v37 }
 0x20a   :  { %v615_v11 = vadd.f32 %v614_v21, %v600_v12  ;;  %v605_v38 = vmul.f32 %v580_v33, %v493_v31 }
 0x20c   :  { %v616_v13 = vadd.f32 %v615_v11, %v601_v14 }
 0x20e   :  { %v617_v30 = vadd.f32 %v616_v13, %v602_v27 }
 0x210   :  { %v618_v19 = vadd.f32 %v617_v30, %v603_v15 }
 0x212   :  { %v619_v36 = vadd.f32 %v618_v19, %v604_v35 }
 0x214   :  { %v620_v32 = vadd.f32 %v619_v36, %v605_v38 }
 0x216   :  { %v621_v43 = vadd.f32 %v620_v32, %v606_v40 }
 0x218   :  { %v622_v45 = vadd.f32 %v621_v43, %v607_v42 }
 0x21a   :  { %v623_v46 = vrot.slane %v622_v45, 4 }
 0x21c   :  { %v624_v48 = vadd.f32 %v623_v46, %v622_v45 }
 0x21e   :  { %v625_v49 = vrot.slane %v624_v48, 2 }
 0x220   :  { %v626_v51 = vadd.f32 %v625_v49, %v624_v48 }
 0x222   :  { %v627_v53 = vrot.slane %v626_v51, 1 }
 0x224   :  { %v628_v55 = vadd.f32 %v627_v53, %v626_v51 }
 0x226   :  { %v639_v56 = vadd.f32 %v638_v54, %v628_v55 }
 0x228   :  { %640 = vst [vmem:[#allocation3] sm:$0x1] %v639_v56 }
 0x229   :  { %793 = shalt.err (!%p790_p4)
}
 0x22a   :  { %650 = dma.vmem_to_hbm [thread:$0]  %s648_s1, 16, %s1074_s7, [#allocation4]  }
 0x22b   :  { %802 = dma.done.wait [#allocation4], 16  }
 0x22c   :  { %803 = vsyncadd [#allocation4], 4294967280 }
 0x22d   :  { %654 = vsyncpa [#allocation4], 1 }

// kernel: tpu_custom_call.1
= control target key start
LH: loop header
LB: loop body
LE: loop exit
PB: predicated region body
PF: predicated region fallthrough
CT: control target
= control target key end

     0   :  { %s1067_s0 = inlined_call_operand.vmem [shape: f32[128,32], index: 0, kind: input, shape index: {}]   ;;  %s1068_s1 = inlined_call_operand.vmem [shape: bf16[32,128], index: 1, kind: input, shape index: {}]   ;;  %s1069_s2 = inlined_call_operand.vmem [shape: f32[1,128], index: 2, kind: input, shape index: {}]   ;;  %s1070_s3 = inlined_call_operand.vmem [shape: bf16[128,128], index: 3, kind: input, shape index: {}]   ;;  %s1071_s4 = inlined_call_operand.vmem [shape: f32[128,1], index: 4, kind: input, shape index: {}]   ;;  %s1072_s5 = inlined_call_operand.vmem [shape: f32[128,1], index: 5, kind: input, shape index: {}]   ;;  %s1073_s6 = inlined_call_operand.<no memory space> [shape: f32[1,1], index: 6, kind: input, shape index: {}]   ;;  %s1074_s7 = inlined_call_operand.hbm [shape: f32[1,128], index: 7, kind: output, shape index: {}]  }
   0x1   :  { %v12_v0 = vstv %s1073_s6 }
   0x2   :  { %13 = vst [vmem:[#allocation2] sm:$0x1] %v12_v0 }
   0x3   :  { %v772_v1 = vld [vmem:[%s1068_s1 + $0x8] sm:$0xff]   ;;  %v773_v2 = vld [vmem:[%s1068_s1] sm:$0xff]   ;;  %vm77_vm0 = vcmask 261120   ;;  %v32_v6 = vld [vmem:[%s1067_s0 + $0x10] sm:$0xff] }
   0x4   :  { %700 = vmatprep.subr.bf16.mxu0 %v772_v1  ;;  %v30_v3 = vld [vmem:[%s1067_s0] sm:$0xff]  ;;  %v31_v4 = vld [vmem:[%s1067_s0 + $0x8] sm:$0xff]  ;;  %v33_v7 = vld [vmem:[%s1067_s0 + $0x18] sm:$0xff] }
   0x5   :  { %701 = vmatpush3.bf16.msra.mxu0 %v772_v1  ;;  %v46_v5 = vpack.c.bf16 %v31_v4, %v30_v3  ;;  %v34_v8 = vld [vmem:[%s1067_s0 + $0x20] sm:$0xff]  ;;  %v35_v9 = vld [vmem:[%s1067_s0 + $0x28] sm:$0xff]  ;;  %v47_v10 = vpack.c.bf16 %v33_v7, %v32_v6  ;;  %v36_v12 = vld [vmem:[%s1067_s0 + $0x30] sm:$0xff] }
   0x6   :  { %702 = vmatprep.subr.bf16.mxu0 %v773_v2  ;;  %v48_v11 = vpack.c.bf16 %v35_v9, %v34_v8  ;;  %v37_v13 = vld [vmem:[%s1067_s0 + $0x38] sm:$0xff]  ;;  %v38_v14 = vld [vmem:[%s1067_s0 + $0x40] sm:$0xff]  ;;  %v39_v15 = vld [vmem:[%s1067_s0 + $0x48] sm:$0xff] }
   0x7   :  { %704 = vmatprep.mubr.msk.bf16.mxu0 %vm77_vm0, %v46_v5 }
   0x9   :  { %703 = vmatpush3.bf16.msra.mxu0 %v773_v2 }
   0xc   :  { %705 = vmatmul.mubr.msk.bf16.vlgmr.msra.gmra.mxu0 %vm77_vm0, %v47_v10 }
   0xd   :  { %708 = vmatprep.mubr.msk.bf16.mxu0 %vm77_vm0, %v48_v11 }
   0xe   :  { %14 = vsyncpa [#allocation4], 0  ;;  %v49_v16 = vpack.c.bf16 %v37_v13, %v36_v12  ;;  %v50_v17 = vpack.c.bf16 %v39_v15, %v38_v14  ;;  %v40_v18 = vld [vmem:[%s1067_s0 + $0x50] sm:$0xff]  ;;  %v41_v19 = vld [vmem:[%s1067_s0 + $0x58] sm:$0xff]  ;;  %v804_v28 = vmov 0  }
   0xf   :  { %v42_v20 = vld [vmem:[%s1067_s0 + $0x60] sm:$0xff]  ;;  %v43_v21 = vld [vmem:[%s1067_s0 + $0x68] sm:$0xff]  ;;  %v51_v22 = vpack.c.bf16 %v41_v19, %v40_v18  ;;  %v44_v24 = vld [vmem:[%s1067_s0 + $0x70] sm:$0xff]  ;;  %770 = vset.pattern.permute.xlu0 %v804_v28  ;;  %771 = vset.pattern.permute.xlu1 %v804_v28 }
  0x10   :  { %v52_v23 = vpack.c.bf16 %v43_v21, %v42_v20  ;;  %v45_v25 = vld [vmem:[%s1067_s0 + $0x78] sm:$0xff]  ;;  %v239_v27 = vld [vmem:[%s1071_s4] sm:$0xff]  ;;  %v240_v29 = vld [vmem:[%s1071_s4 + $0x8] sm:$0xff] }
  0x11   :  { %v53_v26 = vpack.c.bf16 %v45_v25, %v44_v24  ;;  %257 = vperm.xlu0 %770, %v239_v27   ;;  %v241_v30 = vld [vmem:[%s1071_s4 + $0x10] sm:$0xff]  ;;  %v243_v31 = vld [vmem:[%s1071_s4 + $0x20] sm:$0xff]  ;;  %v242_v32 = vld [vmem:[%s1071_s4 + $0x18] sm:$0xff] }
  0x12   :  { %267 = vperm.xlu1 %771, %v241_v30   ;;  %v496_v33 = vld [vmem:[%s1072_s5] sm:$0xff]  ;;  %v244_v34 = vld [vmem:[%s1071_s4 + $0x28] sm:$0xff]  ;;  %v498_v35 = vld [vmem:[%s1072_s5 + $0x10] sm:$0xff] }
  0x13   :  { %v774_v36 = vld [vmem:[%s1070_s3] sm:$0xff]   ;;  %v775_v37 = vld [vmem:[%s1070_s3 + $0x10] sm:$0xff]   ;;  %v497_v38 = vld [vmem:[%s1072_s5 + $0x8] sm:$0xff] }
  0x14   :  { %709 = vmatmul.mubr.msk.bf16.gmra.mxu0 %vm77_vm0, %v49_v16  ;;  %740 = vmatprep.mubr.bf16.mxu1 %v775_v37  ;;  %v245_v39 = vld [vmem:[%s1071_s4 + $0x30] sm:$0xff]  ;;  %v499_v40 = vld [vmem:[%s1072_s5 + $0x18] sm:$0xff]  ;;  %v500_v42 = vld [vmem:[%s1072_s5 + $0x20] sm:$0xff] }
  0x15   :  { %712 = vmatprep.mubr.msk.bf16.mxu0 %vm77_vm0, %v50_v17  ;;  %262 = vperm.xlu0 %770, %v240_v29   ;;  %v246_v41 = vld [vmem:[%s1071_s4 + $0x38] sm:$0xff]  ;;  %v247_v43 = vld [vmem:[%s1071_s4 + $0x40] sm:$0xff]  ;;  %v501_v44 = vld [vmem:[%s1072_s5 + $0x28] sm:$0xff] }
  0x16   :  { %272 = vperm.xlu1 %771, %v242_v32   ;;  %v248_v45 = vld [vmem:[%s1071_s4 + $0x48] sm:$0xff]  ;;  %v502_v46 = vld [vmem:[%s1072_s5 + $0x30] sm:$0xff]  ;;  %v503_v48 = vld [vmem:[%s1072_s5 + $0x38] sm:$0xff] }
  0x17   :  { %v249_v47 = vld [vmem:[%s1071_s4 + $0x50] sm:$0xff]  ;;  %v250_v49 = vld [vmem:[%s1071_s4 + $0x58] sm:$0xff]  ;;  %v504_v50 = vld [vmem:[%s1072_s5 + $0x40] sm:$0xff] }
  0x18   :  { %v251_v51 = vld [vmem:[%s1071_s4 + $0x60] sm:$0xff]  ;;  %v505_v52 = vld [vmem:[%s1072_s5 + $0x48] sm:$0xff]  ;;  %v506_v54 = vld [vmem:[%s1072_s5 + $0x50] sm:$0xff] }
  0x19   :  { %277 = vperm.xlu0 %770, %v243_v31   ;;  %v252_v53 = vld [vmem:[%s1071_s4 + $0x68] sm:$0xff]  ;;  %v995_v56 = vld [vmem:[%s1069_s2] ss:$0 sm:$0xff]  ;;  %v253_v57 = vld [vmem:[%s1071_s4 + $0x70] sm:$0xff] }
  0x1a   :  { %282 = vperm.xlu1 %771, %v244_v34   ;;  %v507_v60 = vld [vmem:[%s1072_s5 + $0x58] sm:$0xff]  ;;  %v508_v5 = vld [vmem:[%s1072_s5 + $0x60] sm:$0xff]  ;;  %v510_v10 = vld [vmem:[%s1072_s5 + $0x70] sm:$0xff] }
  0x1b   :  { %v254_v0 = vld [vmem:[%s1071_s4 + $0x78] sm:$0xff]  ;;  %v509_v13 = vld [vmem:[%s1072_s5 + $0x68] sm:$0xff]  ;;  %v629_v15 = vld [vmem:[#allocation2] sm:$0x1] }
  0x1c   :  { %713 = vmatmul.mubr.msk.bf16.gmra.mxu0 %vm77_vm0, %v51_v22  ;;  %v511_v17 = vld [vmem:[%s1072_s5 + $0x78] sm:$0xff] }
  0x1d   :  { %716 = vmatprep.mubr.msk.bf16.mxu0 %vm77_vm0, %v52_v23  ;;  %514 = vperm.xlu0 %770, %v496_v33  }
  0x1e   :  { %519 = vperm.xlu1 %771, %v497_v38  }
  0x21   :  { %524 = vperm.xlu0 %770, %v498_v35  }
  0x22   :  { %529 = vperm.xlu1 %771, %v499_v40  }
  0x24   :  { %717 = vmatmul.mubr.msk.bf16.gmra.mxu0 %vm77_vm0, %v53_v26 }
  0x25   :  { %736 = vmatprep.mubr.bf16.mxu0 %v774_v36  ;;  %287 = vperm.xlu0 %770, %v245_v39  }
  0x26   :  { %534 = vperm.xlu1 %771, %v500_v42  }
  0x29   :  { %292 = vperm.xlu0 %770, %v246_v41  }
  0x2a   :  { %539 = vperm.xlu1 %771, %v501_v44  }
  0x2d   :  { %297 = vperm.xlu0 %770, %v247_v43  }
  0x2e   :  { %544 = vperm.xlu1 %771, %v502_v46  }
  0x31   :  { %302 = vperm.xlu0 %770, %v248_v45  }
  0x32   :  { %549 = vperm.xlu1 %771, %v503_v48  }
  0x35   :  { %307 = vperm.xlu0 %770, %v249_v47  }
  0x36   :  { %554 = vperm.xlu1 %771, %v504_v50  }
  0x39   :  { %312 = vperm.xlu0 %770, %v250_v49  }
  0x3a   :  { %559 = vperm.xlu1 %771, %v505_v52  }
  0x3d   :  { %317 = vperm.xlu0 %770, %v251_v51  }
  0x3e   :  { %564 = vperm.xlu1 %771, %v506_v54  }
  0x41   :  { %322 = vperm.xlu0 %770, %v252_v53  }
  0x42   :  { %569 = vperm.xlu1 %771, %v507_v60   ;;  %v780_v60 = vld [vmem:[%s1070_s3 + $0x30] sm:$0xff]  }
  0x45   :  { %327 = vperm.xlu0 %770, %v253_v57   ;;  %v777_v57 = vld [vmem:[%s1070_s3 + $0x18] sm:$0xff]  }
  0x46   :  { %574 = vperm.xlu1 %771, %v508_v5  }
  0x49   :  { %332 = vperm.xlu0 %770, %v254_v0  }
  0x4a   :  { %579 = vperm.xlu1 %771, %v509_v13  }
  0x4d   :  { %584 = vperm.xlu0 %770, %v510_v10  }
  0x4e   :  { %589 = vperm.xlu1 %771, %v511_v17  }
  0x51   :  { %632 = vperm.xlu0 %770, %v629_v15  }
  0xcc   :  { %v706_v55 = vpop.f32.mrf.mxu0 }
  0xcd   :  { %v145_v59 = vadd.f32 %v706_v55, %v995_v56 }
  0xce   :  { %v136_v58 = vpop.f32.mrf.mxu0 }
  0xcf   :  { %v137_v62 = vadd.f32 %v995_v56, %v136_v58  ;;  %v201_v2 = vmax.f32 %v145_v59, 0.0  ;;  %v778_v58 = vld [vmem:[%s1070_s3 + $0x20] sm:$0xff]   ;;  %v779_v59 = vld [vmem:[%s1070_s3 + $0x28] sm:$0xff]  }
  0xd0   :  { %v707_v61 = vpop.f32.mrf.mxu0 }
  0xd1   :  { %v148_v63 = vadd.f32 %v707_v61, %v995_v56  ;;  %v199_v7 = vmax.f32 %v137_v62, 0.0  ;;  %v781_v61 = vld [vmem:[%s1070_s3 + $0x38] sm:$0xff]   ;;  %v258_v62 = vpop.permute.xlu0 %257 }
  0xd2   :  { %v139_v1 = vpop.f32.mrf.mxu0 }
  0xd3   :  { %v202_v3 = vmax.f32 %v148_v63, 0.0  ;;  %v140_v4 = vadd.f32 %v995_v56, %v139_v1  ;;  %v268_v63 = vpop.permute.xlu1 %267 }
  0xd4   :  { %v710_v6 = vpop.f32.mrf.mxu0 }
  0xd5   :  { %v1013_v8 = vpack.c.bf16 %v202_v3, %v201_v2  ;;  %v200_v9 = vmax.f32 %v140_v4, 0.0  ;;  %v161_v47 = vadd.f32 %v710_v6, %v995_v56  ;;  %v263_v0 = vpop.permute.xlu0 %262 }
  0xd6   :  { %v152_v11 = vpop.f32.mrf.mxu0 }
  0xd7   :  { %v1018_v12 = vpack.c.bf16 %v200_v9, %v199_v7  ;;  %v205_v49 = vmax.f32 %v161_v47, 0.0  ;;  %v153_v52 = vadd.f32 %v995_v56, %v152_v11  ;;  %v273_v1 = vpop.permute.xlu1 %272 }
  0xd8   :  { %v711_v14 = vpop.f32.mrf.mxu0 }
  0xd9   :  { %v164_v45 = vadd.f32 %v711_v14, %v995_v56  ;;  %v203_v54 = vmax.f32 %v153_v52, 0.0  ;;  %v278_v2 = vpop.permute.xlu0 %277 }
  0xda   :  { %v155_v16 = vpop.f32.mrf.mxu0 }
  0xdb   :  { %v206_v48 = vmax.f32 %v164_v45, 0.0  ;;  %v156_v51 = vadd.f32 %v995_v56, %v155_v16  ;;  %v283_v3 = vpop.permute.xlu1 %282 }
  0xdc   :  { %v714_v18 = vpop.f32.mrf.mxu0 }
  0xdd   :  { %v177_v37 = vadd.f32 %v714_v18, %v995_v56  ;;  %v234_v50 = vpack.c.bf16 %v206_v48, %v205_v49  ;;  %v204_v53 = vmax.f32 %v156_v51, 0.0  ;;  %v515_v4 = vpop.permute.xlu0 %514 }
  0xde   :  { %v168_v19 = vpop.f32.mrf.mxu0 }
  0xdf   :  { %v209_v39 = vmax.f32 %v177_v37, 0.0  ;;  %v169_v42 = vadd.f32 %v995_v56, %v168_v19  ;;  %v233_v55 = vpack.c.bf16 %v204_v53, %v203_v54  ;;  %v520_v5 = vpop.permute.xlu1 %519 }
  0xe0   :  { %v715_v20 = vpop.f32.mrf.mxu0 }
  0xe1   :  { %v180_v35 = vadd.f32 %v715_v20, %v995_v56  ;;  %v207_v44 = vmax.f32 %v169_v42, 0.0  ;;  %v525_v6 = vpop.permute.xlu0 %524 }
  0xe2   :  { %v171_v21 = vpop.f32.mrf.mxu0 }
  0xe3   :  { %v210_v38 = vmax.f32 %v180_v35, 0.0  ;;  %v172_v41 = vadd.f32 %v995_v56, %v171_v21  ;;  %v530_v7 = vpop.permute.xlu1 %529 }
  0xe4   :  { %v718_v22 = vpop.f32.mrf.mxu0 }
  0xe5   :  { %v193_v24 = vadd.f32 %v718_v22, %v995_v56  ;;  %v236_v40 = vpack.c.bf16 %v210_v38, %v209_v39  ;;  %v208_v43 = vmax.f32 %v172_v41, 0.0 }
  0xe6   :  { %v184_v23 = vpop.f32.mrf.mxu0 }
  0xe7   :  { %v185_v26 = vadd.f32 %v995_v56, %v184_v23  ;;  %v213_v29 = vmax.f32 %v193_v24, 0.0  ;;  %v235_v46 = vpack.c.bf16 %v208_v43, %v207_v44  ;;  %v535_v9 = vpop.permute.xlu1 %534 }
  0xe8   :  { %v719_v25 = vpop.f32.mrf.mxu0 }
  0xe9   :  { %v196_v27 = vadd.f32 %v719_v25, %v995_v56  ;;  %v211_v32 = vmax.f32 %v185_v26, 0.0 }
  0xea   :  { %v187_v28 = vpop.f32.mrf.mxu0 }
  0xeb   :  { %v214_v30 = vmax.f32 %v196_v27, 0.0  ;;  %v188_v31 = vadd.f32 %v995_v56, %v187_v28  ;;  %v776_v56 = vld [vmem:[%s1070_s3 + $0x8] sm:$0xff]   ;;  %v540_v11 = vpop.permute.xlu1 %539  ;;  %s805_s3 = smov [#allocation3]  }
  0xec   :  { %s647_s1 = sshll.u32 %s805_s3, 4  ;;  %s648_s1 = int_to_ptr.vmem [resolvable:$true] %s647_s1 }
  0xed   :  { %v238_v33 = vpack.c.bf16 %v214_v30, %v213_v29  ;;  %v212_v34 = vmax.f32 %v188_v31, 0.0  ;;  %s782_s14 = scalar_lea.vmem %s648_s1, 16  ;;  %s786_s15 = scalar_lea.vmem %s648_s1, 32 }
  0xee   :  { %p783_p0 = scmp.ne.s32.totalorder %s648_s1, %s782_s14  ;;  %p787_p1 = scmp.lt.s32.totalorder %s648_s1, %s648_s1 }
  0xef   :  { %v237_v36 = vpack.c.bf16 %v212_v34, %v211_v32  ;;  %720 = vmatprep.subr.bf16.mxu0 %v238_v33  ;;  %752 = vmatprep.subr.bf16.mxu1 %v238_v33  ;;  %v545_v13 = vpop.permute.xlu1 %544  ;;  %p788_p2 = scmp.lt.s32.totalorder %s786_s15, %s782_s14 }
  0xf0   :  { %721 = vmatpush3.bf16.xpose.msra.mxu0 %v238_v33  ;;  %760 = vmatpush3.bf16.xpose.msra.mxu1 %v238_v33 }
  0xf1   :  { %722 = vmatprep.subr.bf16.mxu0 %v237_v36  ;;  %753 = vmatprep.subr.bf16.mxu1 %v237_v36  ;;  %p789_p3 = por %p788_p2, %p787_p1 }
  0xf3   :  { %v550_v15 = vpop.permute.xlu1 %549  ;;  %p790_p4 = pnand %p789_p3, %p783_p0 }
  0xf7   :  { %v555_v19 = vpop.permute.xlu1 %554 }
  0xf8   :  { %723 = vmatpush3.bf16.xpose.msra.mxu0 %v237_v36  ;;  %761 = vmatpush3.bf16.xpose.msra.mxu1 %v237_v36 }
  0xf9   :  { %724 = vmatprep.subr.bf16.mxu0 %v236_v40  ;;  %754 = vmatprep.subr.bf16.mxu1 %v236_v40 }
  0xfb   :  { %v560_v32 = vpop.permute.xlu1 %559 }
  0xff   :  { %v565_v48 = vpop.permute.xlu1 %564 }
 0x100   :  { %725 = vmatpush3.bf16.xpose.msra.mxu0 %v236_v40  ;;  %762 = vmatpush3.bf16.xpose.msra.mxu1 %v236_v40 }
 0x101   :  { %726 = vmatprep.subr.bf16.mxu0 %v235_v46  ;;  %755 = vmatprep.subr.bf16.mxu1 %v235_v46 }
 0x108   :  { %727 = vmatpush3.bf16.xpose.msra.mxu0 %v235_v46  ;;  %763 = vmatpush3.bf16.xpose.msra.mxu1 %v235_v46 }
 0x109   :  { %728 = vmatprep.subr.bf16.mxu0 %v234_v50  ;;  %756 = vmatprep.subr.bf16.mxu1 %v234_v50 }
 0x110   :  { %729 = vmatpush3.bf16.xpose.msra.mxu0 %v234_v50  ;;  %764 = vmatpush3.bf16.xpose.msra.mxu1 %v234_v50 }
 0x111   :  { %730 = vmatprep.subr.bf16.mxu0 %v233_v55  ;;  %757 = vmatprep.subr.bf16.mxu1 %v233_v55 }
 0x118   :  { %731 = vmatpush3.bf16.xpose.msra.mxu0 %v233_v55  ;;  %765 = vmatpush3.bf16.xpose.msra.mxu1 %v233_v55 }
 0x119   :  { %732 = vmatprep.subr.bf16.mxu0 %v1013_v8  ;;  %758 = vmatprep.subr.bf16.mxu1 %v1013_v8 }
 0x120   :  { %733 = vmatpush3.bf16.xpose.msra.mxu0 %v1013_v8  ;;  %766 = vmatpush3.bf16.xpose.msra.mxu1 %v1013_v8  ;;  %v288_v8 = vpop.permute.xlu0 %287 }
 0x121   :  { %734 = vmatprep.subr.bf16.mxu0 %v1018_v12  ;;  %759 = vmatprep.subr.bf16.mxu1 %v1018_v12 }
 0x124   :  { %v293_v10 = vpop.permute.xlu0 %292 }
 0x128   :  { %735 = vmatpush3.bf16.xpose.msra.mxu0 %v1018_v12  ;;  %767 = vmatpush3.bf16.xpose.msra.mxu1 %v1018_v12  ;;  %v298_v12 = vpop.permute.xlu0 %297 }
 0x12c   :  { %v303_v14 = vpop.permute.xlu0 %302 }
 0x12f   :  { %737 = vmatmul.mubr.bf16.vlgmr.msra.gmra.mxu0 %v776_v56  ;;  %741 = vmatmul.mubr.bf16.vlgmr.msra.gmra.mxu1 %v777_v57 }
 0x130   :  { %744 = vmatprep.mubr.bf16.mxu1 %v778_v58  ;;  %v308_v16 = vpop.permute.xlu0 %307 }
 0x134   :  { %v313_v25 = vpop.permute.xlu0 %312 }
 0x137   :  { %745 = vmatmul.mubr.bf16.gmra.mxu1 %v779_v59 }
 0x138   :  { %748 = vmatprep.mubr.bf16.mxu1 %v780_v60  ;;  %v318_v42 = vpop.permute.xlu0 %317 }
 0x13c   :  { %v323_v59 = vpop.permute.xlu0 %322 }
 0x13f   :  { %749 = vmatmul.mubr.bf16.gmra.mxu1 %v781_v61 }
 0x1ef   :  { %v738_v17 = vpop.f32.mrf.mxu0  ;;  %v742_v18 = vpop.f32.mrf.mxu1 }
 0x1f0   :  { %v426_v26 = vadd.f32 %v738_v17, %v268_v63  ;;  %v442_v45 = vadd.f32 %v742_v18, %v288_v8  ;;  %v328_v18 = vpop.permute.xlu0 %327 }
 0x1f1   :  { %v417_v20 = vpop.f32.mrf.mxu0  ;;  %v433_v21 = vpop.f32.mrf.mxu1 }
 0x1f2   :  { %v418_v22 = vadd.f32 %v417_v20, %v258_v62  ;;  %v482_v34 = vmax.f32 %v426_v26, 0.0  ;;  %v434_v35 = vadd.f32 %v433_v21, %v278_v2  ;;  %v486_v55 = vmax.f32 %v442_v45, 0.0 }
 0x1f3   :  { %v739_v23 = vpop.f32.mrf.mxu0  ;;  %v743_v24 = vpop.f32.mrf.mxu1 }
 0x1f4   :  { %v480_v29 = vmax.f32 %v418_v22, 0.0  ;;  %v429_v30 = vadd.f32 %v739_v23, %v273_v1  ;;  %v594_v44 = vmul.f32 %v525_v6, %v482_v34  ;;  %v484_v46 = vmax.f32 %v434_v35, 0.0  ;;  %v570_v1 = vpop.permute.xlu1 %569 }
 0x1f5   :  { %v420_v27 = vpop.f32.mrf.mxu0  ;;  %v436_v28 = vpop.f32.mrf.mxu1  ;;  %v445_v51 = vadd.f32 %v743_v24, %v293_v10 }
 0x1f6   :  { %v421_v31 = vadd.f32 %v420_v27, %v263_v0  ;;  %v592_v38 = vmul.f32 %v515_v4, %v480_v29  ;;  %v483_v39 = vmax.f32 %v429_v30, 0.0  ;;  %v437_v41 = vadd.f32 %v436_v28, %v283_v3  ;;  %v333_v29 = vpop.permute.xlu0 %332 }
 0x1f7   :  { %v746_v33 = vpop.f32.mrf.mxu1  ;;  %v596_v56 = vmul.f32 %v535_v9, %v484_v46  ;;  %v487_v61 = vmax.f32 %v445_v51, 0.0  ;;  %v598_v3 = vmul.f32 %v545_v13, %v486_v55 }
 0x1f8   :  { %v481_v36 = vmax.f32 %v421_v31, 0.0  ;;  %v595_v50 = vmul.f32 %v530_v7, %v483_v39  ;;  %v485_v53 = vmax.f32 %v437_v41, 0.0  ;;  %v575_v23 = vpop.permute.xlu1 %574 }
 0x1f9   :  { %v449_v37 = vpop.f32.mrf.mxu1  ;;  %v599_v7 = vmul.f32 %v550_v15, %v487_v61 }
 0x1fa   :  { %v593_v40 = vmul.f32 %v520_v5, %v481_v36  ;;  %v450_v58 = vadd.f32 %v449_v37, %v298_v12  ;;  %v597_v62 = vmul.f32 %v540_v11, %v485_v53  ;;  %v458_v5 = vadd.f32 %v746_v33, %v308_v16  ;;  %v585_v39 = vpop.permute.xlu0 %584 }
 0x1fb   :  { %v747_v43 = vpop.f32.mrf.mxu1 }
 0x1fc   :  { %v608_v47 = vadd.f32 %v593_v40, %v592_v38  ;;  %v488_v6 = vmax.f32 %v450_v58, 0.0  ;;  %v461_v10 = vadd.f32 %v747_v43, %v313_v25  ;;  %v490_v20 = vmax.f32 %v458_v5, 0.0  ;;  %v580_v33 = vpop.permute.xlu1 %579 }
 0x1fd   :  { %v452_v49 = vpop.f32.mrf.mxu1 }
 0x1fe   :  { %v609_v52 = vadd.f32 %v608_v47, %v594_v44  ;;  %v453_v0 = vadd.f32 %v452_v49, %v303_v14  ;;  %v600_v12 = vmul.f32 %v555_v19, %v488_v6  ;;  %v491_v24 = vmax.f32 %v461_v10, 0.0 }
 0x1ff   :  { %v750_v54 = vpop.f32.mrf.mxu1  ;;  %v602_v27 = vmul.f32 %v565_v48, %v490_v20  ;;  %v635_v44 = vlaneseq }
 0x200   :  { %v610_v57 = vadd.f32 %v609_v52, %v595_v50  ;;  %v489_v17 = vmax.f32 %v453_v0, 0.0  ;;  %v474_v28 = vadd.f32 %v750_v54, %v328_v18  ;;  %v603_v15 = vmul.f32 %v570_v1, %v491_v24  ;;  %v590_v41 = vpop.permute.xlu1 %589  ;;  %v633_v52 = vpop.permute.xlu0 %632 }
 0x201   :  { %v465_v60 = vpop.f32.mrf.mxu1  ;;  %v636_v47 = vshrl.u32 %v635_v44, 7 }
 0x202   :  { %v611_v63 = vadd.f32 %v610_v57, %v596_v56  ;;  %v466_v22 = vadd.f32 %v465_v60, %v318_v42  ;;  %v601_v14 = vmul.f32 %v560_v32, %v489_v17  ;;  %v494_v34 = vmax.f32 %v474_v28, 0.0 }
 0x203   :  { %v751_v2 = vpop.f32.mrf.mxu1  ;;  %v637_v50 = vsub.s32 0, %v636_v47 }
 0x204   :  { %v612_v4 = vadd.f32 %v611_v63, %v597_v62  ;;  %v492_v16 = vmax.f32 %v466_v22, 0.0  ;;  %v477_v25 = vadd.f32 %v751_v2, %v333_v29  ;;  %v606_v40 = vmul.f32 %v585_v39, %v494_v34 }
 0x205   :  { %v468_v9 = vpop.f32.mrf.mxu1  ;;  %v638_v54 = vrot.slane %v633_v52, %v637_v50 }
 0x206   :  { %v613_v8 = vadd.f32 %v612_v4, %v598_v3  ;;  %v469_v26 = vadd.f32 %v468_v9, %v323_v59  ;;  %v604_v35 = vmul.f32 %v575_v23, %v492_v16  ;;  %v495_v37 = vmax.f32 %v477_v25, 0.0 }
 0x208   :  { %v614_v21 = vadd.f32 %v613_v8, %v599_v7  ;;  %v493_v31 = vmax.f32 %v469_v26, 0.0  ;;  %v607_v42 = vmul.f32 %v590_v41, %v495_v37 }
 0x20a   :  { %v615_v11 = vadd.f32 %v614_v21, %v600_v12  ;;  %v605_v38 = vmul.f32 %v580_v33, %v493_v31 }
 0x20c   :  { %v616_v13 = vadd.f32 %v615_v11, %v601_v14 }
 0x20e   :  { %v617_v30 = vadd.f32 %v616_v13, %v602_v27 }
 0x210   :  { %v618_v19 = vadd.f32 %v617_v30, %v603_v15 }
 0x212   :  { %v619_v36 = vadd.f32 %v618_v19, %v604_v35 }
 0x214   :  { %v620_v32 = vadd.f32 %v619_v36, %v605_v38 }
 0x216   :  { %v621_v43 = vadd.f32 %v620_v32, %v606_v40 }
 0x218   :  { %v622_v45 = vadd.f32 %v621_v43, %v607_v42 }
 0x21a   :  { %v623_v46 = vrot.slane %v622_v45, 4 }
 0x21c   :  { %v624_v48 = vadd.f32 %v623_v46, %v622_v45 }
 0x21e   :  { %v625_v49 = vrot.slane %v624_v48, 2 }
 0x220   :  { %v626_v51 = vadd.f32 %v625_v49, %v624_v48 }
 0x222   :  { %v627_v53 = vrot.slane %v626_v51, 1 }
 0x224   :  { %v628_v55 = vadd.f32 %v627_v53, %v626_v51 }
 0x226   :  { %v639_v56 = vadd.f32 %v638_v54, %v628_v55 }
 0x228   :  { %640 = vst [vmem:[#allocation3] sm:$0x1] %v639_v56 }
 0x229   :  { %793 = shalt.err (!%p790_p4)
}
 0x22a   :  { %650 = dma.vmem_to_hbm [thread:$0]  %s648_s1, 16, %s1074_s7, [#allocation4]  }
 0x22b   :  { %802 = dma.done.wait [#allocation4], 16  }
 0x22c   :  { %803 = vsyncadd [#allocation4], 4294967280 }
 0x22d   :  { %654 = vsyncpa [#allocation4], 1 }

</bundles_post_ra>
